<compile_context>
chip_gen: v5e
topology: v5e:2x2
jax: 0.10.0
libtpu: 0.0.40
codegen_flags: <defaults>
</compile_context>

<pallas_src>
import functools

import jax
import jax.numpy as jnp
from jax.experimental import pallas as pl
from jax.experimental.pallas import tpu as pltpu

_LANE = 128
_MIB = 1024 * 1024


def _consensus_kernel(x_ref, o_ref, *, inv_t):
    # x_ref: (Bb, T, Td) block in VMEM; o_ref: (Bb, Td) lane/sublane-dense block.
    # Accumulate in f32 directly inside the reduction (no materialized f32 copy of
    # the tile), multiply by the compile-time constant 1/T, cast once at the store.
    s = jnp.sum(x_ref[...], axis=1, dtype=jnp.float32)
    o_ref[...] = (s * inv_t).astype(o_ref.dtype)


def _round_up(x, m):
    return -(-x // m) * m


def _sublane_pack(itemsize):
    # Elements per packed sublane group: f32 -> 8, bf16 -> 16, int8/fp8 -> 32.
    return max(8, (32 // max(1, itemsize * 8)) * 8)


def _vmem_capacity_bytes():
    try:
        return int(getattr(pltpu.get_tpu_info(), "vmem_capacity_bytes", 128 * _MIB))
    except Exception:
        return 128 * _MIB  # conservative fallback; budget below stays small anyway


def _in_block_bytes(bb, t, td, itemsize):
    pack = _sublane_pack(itemsize)
    return bb * _round_up(t, pack) * _round_up(td, _LANE) * itemsize


def _out_block_bytes(bb, td, itemsize):
    pack = _sublane_pack(itemsize)
    return _round_up(bb, pack) * _round_up(td, _LANE) * itemsize


def _choose_blocks(B, T, D, itemsize):
    """Jointly pick (Bb, Td) against a generation-aware per-buffer VMEM budget.

    Preference: keep Td = D (contiguous per-row DMA) and shrink Bb first; tile D
    only when even the minimum-height block overflows the budget.
    """
    cap = _vmem_capacity_bytes()
    # Per-input-buffer budget (Pallas double-buffers it): ~1/8 of physical VMEM,
    # clamped to [2 MiB, 8 MiB].  ~8 MiB on v5e/v6e (128 MiB) and v7x (64 MiB);
    # beyond that the kernel is already at the HBM roofline on all generations.
    budget = min(8 * _MIB, max(2 * _MIB, cap // 8))

    pack = _sublane_pack(itemsize)
    bb_min = min(B, pack)
    row_bytes = _in_block_bytes(1, T, D, itemsize)  # one batch row, full D, padded

    if bb_min * row_bytes <= budget:
        # Case A: full feature dim; choose as many batch rows as fit.
        bb_fit = budget // row_bytes
        bb_cover = B if B <= pack else _round_up(B, pack)
        if bb_fit >= bb_cover:
            bb = bb_cover                      # whole batch in one (masked) block
        else:
            bb = max(pack, (bb_fit // pack) * pack)  # sublane-dense output rows
        return bb, D, budget

    # Case B: even the minimum block height overflows the budget -> tile D.
    bb = bb_min
    if D % _LANE != 0:
        # Cannot tile a non-multiple-of-128 feature dim; take one oversized block.
        return bb, D, budget
    col_bytes = bb * _round_up(T, pack) * itemsize       # bytes per feature column
    td = max(_LANE, (budget // (col_bytes * _LANE)) * _LANE)
    # Keep per-row transfers >= ~2 KiB so the strided DMA stays efficient.
    td_floor = min(D, _round_up(max(1, 2048 // itemsize), _LANE))
    td = min(D, max(td, td_floor))
    return bb, td, budget


def _ensure_multi_step(B, D, bb, td, itemsize):
    """If the grid would be a single step, split one 'parallel' axis so both v7x
    TensorCores get work (one extra ~0.35 us step: harmless on v5e/v6e)."""
    if (-(-B // bb)) * (-(-D // td)) >= 2:
        return bb, td
    pack = _sublane_pack(itemsize)
    if B > pack:
        half = _round_up(-(-B // 2), pack)
        if half < bb and -(-B // half) >= 2:
            return half, td
    if D > _LANE:
        new_td = max(_LANE, ((td // 2) // _LANE) * _LANE)
        if new_td < td and -(-D // new_td) >= 2:
            return bb, new_td
    return bb, td


def consensus_avg(x, *, min_pallas_bytes=256 * 1024):
    """Mean over axis 1 with keepdims=True, computed in a Pallas TPU kernel.

    Assumes a floating-point dtype (matches PyTorch, whose mean() rejects integer
    tensors).  Accumulation is in f32; the result is cast back to x.dtype.
    """
    B, T, D = x.shape
    itemsize = jnp.dtype(x.dtype).itemsize

    if min_pallas_bytes and B * T * D * itemsize < min_pallas_bytes:
        # Tiny inputs: pallas_call setup / pipeline priming dominates; XLA's fused
        # reduction is faster and avoids a single-block grid that idles a v7x TC.
        return jnp.mean(x, axis=1, keepdims=True)

    bb, td, _ = _choose_blocks(B, T, D, itemsize)
    bb, td = _ensure_multi_step(B, D, bb, td, itemsize)
    grid = (pl.cdiv(B, bb), pl.cdiv(D, td))

    in_bytes = _in_block_bytes(bb, T, td, itemsize)
    out_bytes = _out_block_bytes(bb, td, itemsize)
    # Explicit scoped-VMEM limit: double-buffered input + output blocks plus ~50%
    # headroom for compiler-internal scratch, kept well inside physical VMEM.
    vmem_limit = int(min(max(16 * _MIB, 1.5 * 2 * (in_bytes + out_bytes)),
                         _vmem_capacity_bytes() - 8 * _MIB))

    kernel = functools.partial(_consensus_kernel, inv_t=1.0 / T)

    out2d = pl.pallas_call(
        kernel,
        out_shape=jax.ShapeDtypeStruct((B, D), x.dtype),
        grid=grid,
        in_specs=[pl.BlockSpec((bb, T, td), lambda b, d: (b, 0, d))],
        out_specs=pl.BlockSpec((bb, td), lambda b, d: (b, d)),
        compiler_params=pltpu.CompilerParams(
            dimension_semantics=("parallel", "parallel"),
            vmem_limit_bytes=vmem_limit,
        ),
        cost_estimate=pl.CostEstimate(
            flops=B * T * D + B * D,
            transcendentals=0,
            bytes_accessed=B * T * D * itemsize + B * D * itemsize,
        ),
    )(x)
    # keepdim=True restored in the wrapper (free layout op in XLA).
    return out2d.reshape(B, 1, D)


def consensus_module(x, consensus_type="avg", dim=1, *, min_pallas_bytes=256 * 1024):
    """Mirror of ConsensusModule.forward.

    ConsensusModule's forward always applies SegmentConsensus (mean over dim=1,
    keepdim=True) regardless of the stored consensus_type/dim.
    """
    assert dim == 1, "Reference module always reduces over dim=1"
    return consensus_avg(x, min_pallas_bytes=min_pallas_bytes)


if __name__ == "__main__":
    key = jax.random.PRNGKey(0)
    k1, k2, k3, k4 = jax.random.split(key, 4)

    # 1) Tiny shape implied by the module (batch=2, segments=8, hidden=32).
    #    Force the Pallas path (the default wrapper would take the XLA fast path).
    x = jax.random.normal(k1, (2, 8, 32), dtype=jnp.float32)
    out = jax.block_until_ready(consensus_module(x, min_pallas_bytes=0))
    ref = jnp.mean(x, axis=1, keepdims=True)
    assert out.shape == (2, 1, 32), out.shape
    assert out.dtype == x.dtype, out.dtype
    assert jnp.allclose(out, ref, atol=1e-6, rtol=1e-6)

    # 2) Default call on the same tiny input exercises the small-input fast path.
    out_fast = jax.block_until_ready(consensus_module(x))
    assert jnp.allclose(out_fast, ref, atol=1e-6, rtol=1e-6)

    # 3) Ragged batch (B not a multiple of 8) and a non-128-multiple feature dim.
    x3 = jax.random.normal(k2, (9, 8, 200), dtype=jnp.float32)
    out3 = jax.block_until_ready(consensus_module(x3, min_pallas_bytes=0))
    assert out3.shape == (9, 1, 200)
    assert jnp.allclose(out3, jnp.mean(x3, axis=1, keepdims=True), atol=1e-5, rtol=1e-5)

    # 4) Above the fast-path threshold: Pallas path with a multi-row, multi-step grid.
    x4 = jax.random.normal(k3, (72, 8, 256), dtype=jnp.float32)
    out4 = jax.block_until_ready(consensus_module(x4))
    assert out4.shape == (72, 1, 256)
    assert jnp.allclose(out4, jnp.mean(x4, axis=1, keepdims=True), atol=1e-5, rtol=1e-5)

    # 5) bf16 input: exercises the packing-aware block math and the D split.
    x5 = jax.random.normal(k4, (16, 8, 256), dtype=jnp.bfloat16)
    out5 = jax.block_until_ready(consensus_module(x5, min_pallas_bytes=0))
    ref5 = (jnp.sum(x5.astype(jnp.float32), axis=1, keepdims=True) * (1.0 / 8)).astype(
        jnp.bfloat16
    )
    assert out5.shape == (16, 1, 256) and out5.dtype == jnp.bfloat16
    assert jnp.allclose(
        out5.astype(jnp.float32), ref5.astype(jnp.float32), atol=2e-2, rtol=2e-2
    )

    print("KERNEL_OK")
</pallas_src>

<mosaic_0001>
module attributes {stable_mosaic.version = 11 : i64} {
  func.func @_consensus_kernel(%arg0: i32, %arg1: i32, %arg2: memref<2x8x32xf32, #tpu.memory_space<vmem>>, %arg3: memref<2x32xf32, #tpu.memory_space<vmem>>) attributes {dimension_semantics = [#tpu.dimension_semantics<parallel>, #tpu.dimension_semantics<parallel>], iteration_bounds = array<i64: 1, 1>, scalar_prefetch = 0 : i64, scratch_operands = 0 : i64, tpu.core_type = #tpu.core_type<tc>, window_params = [{transform_indices = @transform_0, window_bounds = array<i64: 2, 8, 32>}, {transform_indices = @transform_1, window_bounds = array<i64: 2, 32>}]} {
    %c0 = arith.constant 0 : index
    %c0_0 = arith.constant 0 : index
    %c0_1 = arith.constant 0 : index
    %0 = vector.load %arg2[%c0, %c0_0, %c0_1] : memref<2x8x32xf32, #tpu.memory_space<vmem>>, vector<2x8x32xf32>
    %cst = arith.constant dense<0.000000e+00> : vector<2x32xf32>
    %1 = vector.multi_reduction <add>, %0, %cst [1] : vector<2x8x32xf32> to vector<2x32xf32>
    %cst_2 = arith.constant 1.250000e-01 : f32
    %2 = vector.broadcast %cst_2 : f32 to vector<2x32xf32>
    %3 = arith.mulf %1, %2 : vector<2x32xf32>
    %c0_3 = arith.constant 0 : index
    %c0_4 = arith.constant 0 : index
    %4 = vector.load %arg3[%c0_3, %c0_4] : memref<2x32xf32, #tpu.memory_space<vmem>>, vector<2x32xf32>
    tpu.vector_store %arg3[%c0_3, %c0_4], %3 {strides = array<i32>} : memref<2x32xf32, #tpu.memory_space<vmem>>, vector<2x32xf32>,
    return
  }
  func.func @transform_0(%arg0: i32, %arg1: i32) -> (i32, i32, i32) {
    %c0_i32 = arith.constant 0 : i32
    %c0_i32_0 = arith.constant 0 : i32
    return %arg0, %c0_i32, %arg1 : i32, i32, i32
  }
  func.func @transform_1(%arg0: i32, %arg1: i32) -> (i32, i32) {
    %c0_i32 = arith.constant 0 : i32
    return %arg0, %arg1 : i32, i32
  }
}

</mosaic_0001>

<bundles_post_ra>
// kernel: tpu_custom_call.1
= control target key start
LH: loop header
LB: loop body
LE: loop exit
PB: predicated region body
PF: predicated region fallthrough
CT: control target
= control target key end

     0   :  { %6 = vsyncpa [#allocation3], 0  ;;  %s144_s0 = inlined_call_operand.hbm [shape: f32[2,8,32], index: 0, kind: input, shape index: {}]   ;;  %s145_s1 = inlined_call_operand.hbm [shape: f32[2,32], index: 1, kind: output, shape index: {}]  }
   0x1   :  { %7 = vsyncpa [#allocation4], 0  ;;  %s12_s8 = sshll.u32 %s144_s0, 4  ;;  %s124_s9 = smov [#allocation2]   ;;  %s13_s8 = int_to_ptr.hbm [resolvable:$true] %s12_s8 }
   0x2   :  { %s14_s10 = sshll.u32 %s124_s9, 4  ;;  %s125_s11 = smov 128   ;;  %s15_s10 = int_to_ptr.vmem [resolvable:$true] %s14_s10 }
   0x3   :  { %s126_s12 = smov 8  }
   0x4   :  { %20 = dma.hbm_to_vmem [thread:$0]  %s13_s8, 256, %s15_s10, [#allocation3], %s125_s11, %s125_s11, %s126_s12  }
   0x5   :  { %120 = dma.done.wait [#allocation3], 256  }
   0x6   :  { %121 = vsyncadd [#allocation3], 4294967040  ;;  %vm27_vm0 = vcmask 261120   ;;  %v25_v0 = vld [vmem:[#allocation2] sm:$0xff]  ;;  %v26_v1 = vld [vmem:[#allocation2 + $0x8] sm:$0xff]  ;;  %s127_s0 = smov [#allocation5]  }
   0x7   :  { %v28_v2 = vsel %vm27_vm0, %v25_v0, 0.0  ;;  %v35_v3 = vsel %vm27_vm0, %v26_v1, 0.0  ;;  %s56_s13 = sshll.u32 %s127_s0, 4  ;;  %s58_s16 = sshll.u32 %s145_s1, 4  ;;  %vm46_vm1 = vcmask 1041409   ;;  %vm49_vm2 = vcmask 254976   ;;  %s57_s13 = int_to_ptr.vmem [resolvable:$true] %s56_s13  ;;  %s59_s16 = int_to_ptr.hbm [resolvable:$true] %s58_s16 }
   0x8   :  { %v29_v4 = vrot.slane %v28_v2, 4  ;;  %v36_v5 = vrot.slane %v35_v3, 4 }
   0xa   :  { %v30_v6 = vadd.f32 %v29_v4, %v28_v2  ;;  %v37_v7 = vadd.f32 %v36_v5, %v35_v3 }
   0xc   :  { %v31_v8 = vrot.slane %v30_v6, 2  ;;  %v38_v9 = vrot.slane %v37_v7, 2 }
   0xe   :  { %v32_v10 = vadd.f32 %v31_v8, %v30_v6  ;;  %v39_v11 = vadd.f32 %v38_v9, %v37_v7 }
  0x10   :  { %v33_v12 = vrot.slane %v32_v10, 1  ;;  %v40_v13 = vrot.slane %v39_v11, 1 }
  0x12   :  { %v34_v14 = vadd.f32 %v33_v12, %v32_v10  ;;  %v41_v15 = vadd.f32 %v40_v13, %v39_v11 }
  0x14   :  { %v42_v16 = vmul.f32 0.125, %v34_v14  ;;  %v43_v17 = vmul.f32 0.125, %v41_v15 }
  0x16   :  { %v47_v18 = vsel %vm46_vm1, %v43_v17, %v42_v16 }
  0x17   :  { %50 = vst.msk [vmem:[#allocation5] sm:$0x3] %vm49_vm2, %v47_v18 }
  0x18   :  { %61 = dma.vmem_to_hbm [thread:$0]  %s57_s13, 32, %s59_s16, [#allocation4]  }
  0x19   :  { %122 = dma.done.wait [#allocation4], 32  }
  0x1a   :  { %123 = vsyncadd [#allocation4], 4294967264 }
  0x1b   :  { %66 = vsyncpa [#allocation3], 1 }
  0x1c   :  { %67 = vsyncpa [#allocation4], 1 }

</bundles_post_ra>
